<compile_context>
chip_gen: v6e
topology: v6e:2x2x1
jax: 0.10.0
libtpu: 0.0.40
codegen_flags: <defaults>
</compile_context>

<pallas_src>
import functools

import jax
import jax.numpy as jnp
from jax import lax
from jax.experimental import pallas as pl
from jax.experimental.pallas import tpu as pltpu

EPS = 1e-5          # nn.InstanceNorm2d default
NEG_SLOPE = 0.2     # LeakyReLU(0.2)
VMEM_LIMIT = 32 * 1024 * 1024   # explicit scoped-VMEM budget (safe on v5e/v6e/v7x)


def _round_up(a, b):
    return ((a + b - 1) // b) * b


# ----------------------------------------------------------------------------
# Pallas kernels
# ----------------------------------------------------------------------------
def conv_moments_kernel(p_ref, w_ref, conv_ref, mom_ref):
    """grid = (N, n_hw_tiles); hw axis is the 'arbitrary' (accumulation) axis.

    p_ref:    (1, thw, Kpad)  im2col patch tile
    w_ref:    (Kpad, Cpad)    flattened, zero-padded conv weight
    conv_ref: (1, thw, Cpad)  conv output tile
    mom_ref:  (1, 2, Cpad)    [sum, sum-of-squares] accumulated over hw tiles
    """
    j = pl.program_id(1)

    @pl.when(j == 0)
    def _():
        mom_ref[...] = jnp.zeros_like(mom_ref)

    conv = jnp.dot(p_ref[0], w_ref[...], preferred_element_type=jnp.float32)
    conv_ref[0] = conv.astype(conv_ref.dtype)

    s = jnp.sum(conv, axis=0, keepdims=True)            # (1, Cpad)
    ss = jnp.sum(conv * conv, axis=0, keepdims=True)    # (1, Cpad)
    mom_ref[0] = mom_ref[0] + jnp.concatenate([s, ss], axis=0)


def norm_lrelu_kernel(mom_ref, conv_ref, o_ref, *, inv_hw):
    """grid = (N, n_hw_tiles); fully parallel.

    mom_ref:  (1, 2, Cpad)
    conv_ref: (1, thw, Cpad)
    o_ref:    (1, thw, Cpad)
    """
    conv = conv_ref[0]                                   # (thw, Cpad)
    mom = mom_ref[0]                                     # (2, Cpad)
    mean = mom[0:1, :] * inv_hw                          # (1, Cpad)
    var = jnp.maximum(mom[1:2, :] * inv_hw - mean * mean, 0.0)
    y = (conv - mean) * lax.rsqrt(var + EPS)
    o_ref[0] = jnp.maximum(y, NEG_SLOPE * y).astype(o_ref.dtype)


# ----------------------------------------------------------------------------
# Wrapper-side layout plumbing (exact PyTorch semantics)
# ----------------------------------------------------------------------------
def _pad_concat(x1, x2):
    """F.pad(x1, [dX//2, dX-dX//2, dY//2, dY-dY//2]); torch.cat((x2, x1), dim=1)."""
    dy = x2.shape[2] - x1.shape[2]
    dx = x2.shape[3] - x1.shape[3]
    x1p = jnp.pad(x1, ((0, 0), (0, 0), (dy // 2, dy - dy // 2),
                       (dx // 2, dx - dx // 2)))
    return jnp.concatenate([x2, x1p], axis=1)


def _upsample_bilinear_x2(x):
    """nn.Upsample(scale_factor=2, mode='bilinear', align_corners=False), NCHW."""
    _, _, H, W = x.shape

    def src_index(L):
        d = jnp.arange(2 * L, dtype=jnp.float32)
        s = jnp.maximum((d + 0.5) * 0.5 - 0.5, 0.0)      # clamp lower bound (PyTorch)
        i0 = jnp.floor(s).astype(jnp.int32)
        i1 = jnp.minimum(i0 + 1, L - 1)
        f = s - i0.astype(jnp.float32)
        return i0, i1, f

    h0, h1, fh = src_index(H)
    w0, w1, fw = src_index(W)
    xr = (x[:, :, h0, :] * (1.0 - fh)[None, None, :, None]
          + x[:, :, h1, :] * fh[None, None, :, None])
    xc = (xr[:, :, :, w0] * (1.0 - fw)[None, None, None, :]
          + xr[:, :, :, w1] * fw[None, None, None, :])
    return xc


def _preprocess(x1, x2):
    return _upsample_bilinear_x2(_pad_concat(x1, x2))


# ----------------------------------------------------------------------------
# Pallas forward
# ----------------------------------------------------------------------------
def up_forward(x1, x2, w_hwio, bias=None):
    """x1: (N, C1, H1, W1); x2: (N, C2, H2, W2); w_hwio: (3, 3, C1+C2, Cout).

    `bias` is accepted for interface parity but intentionally unused:
    InstanceNorm2d(affine=False) cancels a per-channel bias exactly.
    """
    del bias
    x = _preprocess(x1, x2)                               # (N, Cin, Ho, Wo)
    N, Cin, Ho, Wo = x.shape
    KH, KW, _, Cout = w_hwio.shape
    HW = Ho * Wo
    K = KH * KW * Cin

    # NCHW -> NHWC, spatial pad 1, im2col (stride 1). Feature order (kh, kw, cin).
    xh = jnp.transpose(x, (0, 2, 3, 1))
    xp = jnp.pad(xh, ((0, 0), (1, 1), (1, 1), (0, 0)))
    cols = [xp[:, kh:kh + Ho, kw:kw + Wo, :] for kh in range(KH) for kw in range(KW)]
    patches = jnp.concatenate(cols, axis=-1).reshape(N, HW, K)

    # Lane-dense padding + HW tiling.
    Kpad = _round_up(K, 128)
    Cpad = _round_up(Cout, 128)
    thw = 512 if HW >= 512 else _round_up(HW, 8)
    HWpad = _round_up(HW, thw)
    nhw = HWpad // thw

    patches = jnp.pad(patches, ((0, 0), (0, HWpad - HW), (0, Kpad - K))
                      ).astype(jnp.float32)
    w2 = jnp.pad(w_hwio.reshape(K, Cout), ((0, Kpad - K), (0, Cpad - Cout))
                 ).astype(jnp.float32)

    # Pass 1: conv tiles + one-pass moments (sum, sum of squares).
    conv_out, moments = pl.pallas_call(
        conv_moments_kernel,
        out_shape=(jax.ShapeDtypeStruct((N, HWpad, Cpad), jnp.float32),
                   jax.ShapeDtypeStruct((N, 2, Cpad), jnp.float32)),
        grid_spec=pltpu.PrefetchScalarGridSpec(
            num_scalar_prefetch=0,
            grid=(N, nhw),
            in_specs=[
                pl.BlockSpec((1, thw, Kpad), lambda n, j: (n, j, 0)),
                pl.BlockSpec((Kpad, Cpad), lambda n, j: (0, 0)),
            ],
            out_specs=(
                pl.BlockSpec((1, thw, Cpad), lambda n, j: (n, j, 0)),
                pl.BlockSpec((1, 2, Cpad), lambda n, j: (n, 0, 0)),
            ),
        ),
        compiler_params=pltpu.CompilerParams(
            dimension_semantics=("parallel", "arbitrary"),
            vmem_limit_bytes=VMEM_LIMIT),
    )(patches, w2)

    # Pass 2: normalize + LeakyReLU, fully parallel over (batch, hw-tile).
    y = pl.pallas_call(
        functools.partial(norm_lrelu_kernel, inv_hw=1.0 / float(HW)),
        out_shape=jax.ShapeDtypeStruct((N, HWpad, Cpad), x1.dtype),
        grid_spec=pltpu.PrefetchScalarGridSpec(
            num_scalar_prefetch=0,
            grid=(N, nhw),
            in_specs=[
                pl.BlockSpec((1, 2, Cpad), lambda n, j: (n, 0, 0)),
                pl.BlockSpec((1, thw, Cpad), lambda n, j: (n, j, 0)),
            ],
            out_specs=pl.BlockSpec((1, thw, Cpad), lambda n, j: (n, j, 0)),
        ),
        compiler_params=pltpu.CompilerParams(
            dimension_semantics=("parallel", "parallel"),
            vmem_limit_bytes=VMEM_LIMIT),
    )(moments, conv_out)

    y = y[:, :HW, :Cout].reshape(N, Ho, Wo, Cout)
    return jnp.transpose(y, (0, 3, 1, 2))                 # back to NCHW


# ----------------------------------------------------------------------------
# Pure-JAX reference of the PyTorch module (with conv bias) for validation
# ----------------------------------------------------------------------------
def reference_forward(x1, x2, w_hwio, bias):
    x = _preprocess(x1, x2)
    w_oihw = jnp.transpose(w_hwio, (3, 2, 0, 1))          # (Cout, Cin, KH, KW)
    conv = lax.conv_general_dilated(
        x, w_oihw, window_strides=(1, 1), padding=((1, 1), (1, 1)),
        dimension_numbers=("NCHW", "OIHW", "NCHW"))
    conv = conv + bias[None, :, None, None]
    mean = jnp.mean(conv, axis=(2, 3), keepdims=True)
    var = jnp.mean((conv - mean) ** 2, axis=(2, 3), keepdims=True)
    y = (conv - mean) * lax.rsqrt(var + EPS)
    return jnp.where(y >= 0, y, NEG_SLOPE * y)


if __name__ == "__main__":
    key = jax.random.PRNGKey(0)
    N = 2
    C1, C2 = 2, 2              # decoder / skip channels -> in_ch = 4
    H2 = W2 = 16               # skip-connection spatial size
    H1 = W1 = 15               # decoder feature 1 px smaller -> exercises F.pad
    out_ch = 8

    k1, k2, kw, kb = jax.random.split(key, 4)
    x1 = jax.random.normal(k1, (N, C1, H1, W1), dtype=jnp.float32)
    x2 = jax.random.normal(k2, (N, C2, H2, W2), dtype=jnp.float32)

    in_ch = C1 + C2
    # Deterministic xavier_uniform_ weight (HWIO layout) + default Conv2d bias init.
    fan_in, fan_out = in_ch * 9, out_ch * 9
    bound_w = (6.0 / (fan_in + fan_out)) ** 0.5
    w = jax.random.uniform(kw, (3, 3, in_ch, out_ch), jnp.float32, -bound_w, bound_w)
    bound_b = 1.0 / (fan_in ** 0.5)
    b = jax.random.uniform(kb, (out_ch,), jnp.float32, -bound_b, bound_b)

    out = jax.block_until_ready(up_forward(x1, x2, w, b))
    ref = jax.block_until_ready(reference_forward(x1, x2, w, b))

    assert out.shape == (N, out_ch, 2 * H2, 2 * W2), out.shape
    err = float(jnp.max(jnp.abs(out - ref)))
    assert err < 1e-4, err
    print("KERNEL_OK")
</pallas_src>

<mosaic_0001>
module attributes {stable_mosaic.version = 11 : i64} {
  func.func @conv_moments_kernel(%arg0: i32, %arg1: i32, %arg2: memref<1x512x128xf32, #tpu.memory_space<vmem>>, %arg3: memref<128x128xf32, #tpu.memory_space<vmem>>, %arg4: memref<1x512x128xf32, #tpu.memory_space<vmem>>, %arg5: memref<1x2x128xf32, #tpu.memory_space<vmem>>) attributes {dimension_semantics = [#tpu.dimension_semantics<parallel>, #tpu.dimension_semantics<arbitrary>], iteration_bounds = array<i64: 2, 2>, scalar_prefetch = 0 : i64, scratch_operands = 0 : i64, tpu.core_type = #tpu.core_type<tc>, window_params = [{transform_indices = @transform_0, window_bounds = array<i64: 1, 512, 128>}, {pipeline_mode = #tpu.pipeline_mode<synchronous>, transform_indices = @transform_1, window_bounds = array<i64: 128, 128>}, {transform_indices = @transform_2, window_bounds = array<i64: 1, 512, 128>}, {transform_indices = @transform_3, window_bounds = array<i64: 1, 2, 128>}]} {
    %c0_i32 = arith.constant 0 : i32
    %0 = arith.cmpi eq, %arg1, %c0_i32 : i32
    %1 = arith.extui %0 : i1 to i32
    %c0_i32_0 = arith.constant 0 : i32
    %2 = arith.cmpi ne, %1, %c0_i32_0 : i32
    scf.if %2 {
      %cst_16 = arith.constant 0.000000e+00 : f32
      %22 = vector.broadcast %cst_16 : f32 to vector<1x2x128xf32>
      %c0_17 = arith.constant 0 : index
      %c0_18 = arith.constant 0 : index
      %c0_19 = arith.constant 0 : index
      %23 = vector.load %arg5[%c0_17, %c0_18, %c0_19] : memref<1x2x128xf32, #tpu.memory_space<vmem>>, vector<1x2x128xf32>
      tpu.vector_store %arg5[%c0_17, %c0_18, %c0_19], %22 {strides = array<i32>} : memref<1x2x128xf32, #tpu.memory_space<vmem>>, vector<1x2x128xf32>,
    } else {
    }
    %c0 = arith.constant 0 : index
    %c0_1 = arith.constant 0 : index
    %c0_2 = arith.constant 0 : index
    %3 = vector.load %arg2[%c0, %c0_1, %c0_2] : memref<1x512x128xf32, #tpu.memory_space<vmem>>, vector<1x512x128xf32>
    %4 = vector.shape_cast %3 : vector<1x512x128xf32> to vector<512x128xf32>
    %c0_3 = arith.constant 0 : index
    %c0_4 = arith.constant 0 : index
    %5 = vector.load %arg3[%c0_3, %c0_4] : memref<128x128xf32, #tpu.memory_space<vmem>>, vector<128x128xf32>
    %cst = arith.constant dense<0.000000e+00> : vector<512x128xf32>
    %6 = tpu.matmul %4, %5, %cst {dimension_numbers = #tpu.dot_dimension_numbers<[1], [0], [0], [1], [0, 0, 1, 1], [], []>} : vector<512x128xf32>, vector<128x128xf32>, vector<512x128xf32> -> vector<512x128xf32>
    %c0_5 = arith.constant 0 : index
    %c0_6 = arith.constant 0 : index
    %c0_7 = arith.constant 0 : index
    %7 = vector.load %arg4[%c0_5, %c0_6, %c0_7] : memref<1x512x128xf32, #tpu.memory_space<vmem>>, vector<1x512x128xf32>
    %8 = vector.shape_cast %7 : vector<1x512x128xf32> to vector<512x128xf32>
    %9 = vector.shape_cast %6 : vector<512x128xf32> to vector<1x512x128xf32>
    tpu.vector_store %arg4[%c0_5, %c0_6, %c0_7], %9 {strides = array<i32>} : memref<1x512x128xf32, #tpu.memory_space<vmem>>, vector<1x512x128xf32>,
    %cst_8 = arith.constant dense<0.000000e+00> : vector<128xf32>
    %10 = vector.multi_reduction <add>, %6, %cst_8 [0] : vector<512x128xf32> to vector<128xf32>
    %11 = vector.shape_cast %10 : vector<128xf32> to vector<1x128xf32>
    %12 = arith.mulf %6, %6 : vector<512x128xf32>
    %cst_9 = arith.constant dense<0.000000e+00> : vector<128xf32>
    %13 = vector.multi_reduction <add>, %12, %cst_9 [0] : vector<512x128xf32> to vector<128xf32>
    %14 = vector.shape_cast %13 : vector<128xf32> to vector<1x128xf32>
    %c0_10 = arith.constant 0 : index
    %c0_11 = arith.constant 0 : index
    %c0_12 = arith.constant 0 : index
    %15 = vector.load %arg5[%c0_10, %c0_11, %c0_12] : memref<1x2x128xf32, #tpu.memory_space<vmem>>, vector<1x2x128xf32>
    %16 = vector.shape_cast %15 : vector<1x2x128xf32> to vector<2x128xf32>
    %17 = tpu.concatenate %11, %14 in 0 : vector<1x128xf32>, vector<1x128xf32> -> vector<2x128xf32>
    %18 = arith.addf %16, %17 : vector<2x128xf32>
    %c0_13 = arith.constant 0 : index
    %c0_14 = arith.constant 0 : index
    %c0_15 = arith.constant 0 : index
    %19 = vector.load %arg5[%c0_13, %c0_14, %c0_15] : memref<1x2x128xf32, #tpu.memory_space<vmem>>, vector<1x2x128xf32>
    %20 = vector.shape_cast %19 : vector<1x2x128xf32> to vector<2x128xf32>
    %21 = vector.shape_cast %18 : vector<2x128xf32> to vector<1x2x128xf32>
    tpu.vector_store %arg5[%c0_13, %c0_14, %c0_15], %21 {strides = array<i32>} : memref<1x2x128xf32, #tpu.memory_space<vmem>>, vector<1x2x128xf32>,
    return
  }
  func.func @transform_0(%arg0: i32, %arg1: i32) -> (i32, i32, i32) {
    %c0_i32 = arith.constant 0 : i32
    %c0_i32_0 = arith.constant 0 : i32
    return %arg0, %arg1, %c0_i32 : i32, i32, i32
  }
  func.func @transform_1(%arg0: i32, %arg1: i32) -> (i32, i32) {
    %c0_i32 = arith.constant 0 : i32
    %c0_i32_0 = arith.constant 0 : i32
    %c0_i32_1 = arith.constant 0 : i32
    return %c0_i32, %c0_i32_0 : i32, i32
  }
  func.func @transform_2(%arg0: i32, %arg1: i32) -> (i32, i32, i32) {
    %c0_i32 = arith.constant 0 : i32
    %c0_i32_0 = arith.constant 0 : i32
    return %arg0, %arg1, %c0_i32 : i32, i32, i32
  }
  func.func @transform_3(%arg0: i32, %arg1: i32) -> (i32, i32, i32) {
    %c0_i32 = arith.constant 0 : i32
    %c0_i32_0 = arith.constant 0 : i32
    %c0_i32_1 = arith.constant 0 : i32
    return %arg0, %c0_i32, %c0_i32_0 : i32, i32, i32
  }
}

</mosaic_0001>

<bundles_post_ra>
// kernel: tpu_custom_call.1
= control target key start
LH: loop header
LB: loop body
LE: loop exit
PB: predicated region body
PF: predicated region fallthrough
CT: control target
= control target key end

     0   :  { %s2370_s0 = inlined_call_operand.hbm [shape: f32[2,1024,128], index: 0, kind: input, shape index: {}]   ;;  %s2371_s1 = inlined_call_operand.hbm [shape: f32[128,128], index: 1, kind: input, shape index: {}]   ;;  %s2372_s2 = inlined_call_operand.hbm [shape: f32[2,1024,128], index: 2, kind: output, shape index: {0}]   ;;  %s2373_s3 = inlined_call_operand.hbm [shape: f32[2,2,128], index: 3, kind: output, shape index: {1}]  }
   0x1   :  { %2389 = sst [smem:[#allocation21_spill]] %s2371_s1 }
   0x2   :  { %2390 = sst [smem:[#allocation22_spill]] %s2372_s2 }
   0x3   :  { %2391 = sst [smem:[#allocation23_spill]] %s2373_s3 }
   0x4   :  { %9 = vsyncpa [#allocation3], 0 }
   0x5   :  { %11 = vsyncpa [#allocation3 + $0x1], 0 }
   0x6   :  { %12 = vsyncpa [#allocation6], 0 }
   0x7   :  { %13 = vsyncpa [#allocation4], 0 }
   0x8   :  { %15 = vsyncpa [#allocation4 + $0x1], 0 }
   0x9   :  { %16 = vsyncpa [#allocation9], 0 }
   0xa   :  { %18 = vsyncpa [#allocation9 + $0x1], 0  ;;  %s1767_s12 = smov 0   ;;  %s1769_s13 = smov 0  }
   0xb   :  { %s1771_s14 = smov 0   ;;  %s1773_s15 = smov 0  }
   0xc   :  { %s1775_s16 = smov 0   ;;  %s1777_s17 = smov 0  }
   0xd   :  { %s1779_s18 = smov 0   ;;  %s1781_s19 = smov 0  }
   0xe   :  { %s1783_s20 = smov 0   ;;  %s1785_s21 = smov 0  }
   0xf   :  { %s1787_s22 = smov 0  }
  0x10 LB: > { %2392 = sst [smem:[#allocation14_spill]] %s1696_s12  ;;  %s1142_s23 = sadd.s32 4294967295, %s1736_s22   ;;  %s1736_s22 = sphi %s1787_s22, %s24_s22   ;;  %s1732_s21 = sphi %s1785_s21, %s2436_s21   ;;  %s1728_s20 = sphi %s1783_s20, %s2435_s20   ;;  %s1724_s19 = sphi %s1781_s19, %s2434_s19   ;;  %s1720_s18 = sphi %s1779_s18, %s2433_s18   ;;  %s1716_s17 = sphi %s1777_s17, %s2432_s17   ;;  %s1712_s16 = sphi %s1775_s16, %s2431_s16   ;;  %s1708_s15 = sphi %s1773_s15, %s2430_s15   ;;  %s1704_s14 = sphi %s1771_s14, %s2429_s14   ;;  %s1700_s13 = sphi %s1769_s13, %s2428_s13   ;;  %s1696_s12 = sphi %s1767_s12, %s2427_s12  }
  0x11   : > { %2393 = sst [smem:[#allocation15_spill]] %s1708_s15  ;;  %s1143_s24 = sadd.s32 4294967294, %s1736_s22  }
  0x12   : > { %p58_p0 = scmp.ne.s32.totalorder %s1712_s16, %s1708_s15  ;;  %p1826_p1 = scmp.eq.s32.totalorder %s1142_s23, 0 }
  0x13   : > { %p1830_p2 = scmp.eq.s32.totalorder %s1142_s23, 3  ;;  %p111_p3 = scmp.eq.s32.totalorder %s1143_s24, 3 }
  0x14   : > { %p1836_p4 = por %p1826_p1, %p58_p0  ;;  %p130_p6 = scmp.ne.s32.totalorder %s1704_s14, %s1700_s13 }
  0x15   : > { %p1841_p5 = por %p111_p3, %p58_p0  ;;  %p136_p7 = scmp.ne.s32.totalorder %s1700_s13, %s1696_s12 }
  0x16   : > { %s2396_s27 = scalar_select %p1836_p4, 1, 0 }
  0x17   : > { %s2397_s29 = scalar_select %p1841_p5, 1, 0 }
  0x18   : > { %p1144_p8 = scmp.ge.s32.totalorder %s1736_s22, 1  ;;  %p1852_p9 = por %p130_p6, %p1830_p2 }
  0x19   : > { %2398 = sst [smem:[#allocation16_spill]] %s2397_s29  ;;  %p144_p10 = scmp.lt.s32.totalorder %s1736_s22, 5 }
  0x1a   : > { %s2399_s30 = scalar_select %p1852_p9, 1, 0 }
  0x1b   : > { %p1857_p11 = por %p136_p7, %p111_p3  ;;  %p1861_p12 = pnand %p1144_p8, %p144_p10 }
  0x1c   : > { %2400 = sst [smem:[#allocation17_spill]] %s2399_s30  ;;  %s1738_s6 = smov [#allocation5]  }
  0x1d   : > { %s2401_s4 = scalar_select %p1857_p11, 1, 0 }
  0x1e   : > { %s156_s7 = sshll.u32 %s1738_s6, 4  ;;  %p1415_p13 = pneg %p1861_p12  ;;  %s157_s7 = int_to_ptr.vmem [resolvable:$true] %s156_s7 }
  0x1f   : > { %2402 = sst [smem:[#allocation18_spill]] %s2401_s4  ;;  %s1539_s8 = scalar_lea.vmem %s157_s7, 2048 }
  0x20   : > { %p1416_p0 = pnand %p1415_p13, %p1826_p1  ;;  %p1540_p5 = scmp.ne.s32.totalorder %s157_s7, %s1539_s8 }
  0x21   : > { %p1547_p7 = scmp.lt.s32.totalorder %s157_s7, %s157_s7  ;;  %p1548_p4 = scmp.lt.s32.totalorder %s1539_s8, %s1539_s8 }
  0x22   : > { %p1530_p6 = pneg %p1416_p0 }
  0x23   : > { %p1549_p11 = por %p1548_p4, %p1547_p7 }
  0x24   : > { %p1542_p9 = pnand %p1540_p5, %p1530_p6 }
  0x26   : > { %p1543_p3 = pneg %p1542_p9 }
  0x28   : > { %p1550_p8 = pnand %p1549_p11, %p1543_p3 }
  0x2a   : > { %1553 = shalt.err (!%p1550_p8)
}
  0x2b   : > { %s2376_s9 = smov 128   ;;  %s2377_s10 = smov 8  }
  0x2c   : > { %s2404_s1 = sld [smem:[#allocation21_spill]]  ;;  %s33_s24 = sadd.s32 1, %s1728_s20 }
  0x2d   : > { %s36_s6 = sadd.s32 1, %s1732_s21  ;;  %p34_p4 = scmp.ge.s32.totalorder %s33_s24, 2 }
  0x2e   : > { %s45_s8 = sadd.s32 1, %s1716_s17  ;;  %p52_p5 = scmp.ne.s32.totalorder %s1716_s17, %s1712_s16 }
  0x2f   : > { %p53_p9 = scmp.eq.s32.totalorder %s1736_s22, 0  ;;  %s2438_s24 = smov (%p34_p4, %s33_s24), 0 }
  0x30   : > { %2405 = sst [smem:[#allocation19_spill]] %s2438_s24  ;;  %s2440_s6 = smov (!%p34_p4, %s36_s6), %s1732_s21 }
  0x31   : > { %s41_s28 = ssub.s32 %s1728_s20, %s2438_s24  ;;  %p1886_p10 = por %p53_p9, %p52_p5 }
  0x32   : > { %1418 = dma.hbm_to_vmem [thread:$0]  (!%p1416_p0), %s2404_s1, 2048, %s157_s7, [#allocation6], %s2376_s9, %s2376_s9, %s2377_s10  }
  0x33   : > { %p38_p11 = scmp.ge.s32.totalorder %s2440_s6, 2  ;;  %p1892_p13 = por %p1830_p2, %p52_p5 }
  0x34   : > { %p1431_p0 = scmp.lt.s32.totalorder %s1736_s22, 4  ;;  %s170_s23 = sand.u32 1, %s1716_s17  }
  0x35   : > { %s2407_s7 = scalar_select %p1892_p13, 1, 0 }
  0x36   : > { %s2442_s6 = smov (%p38_p11, %s2440_s6), 0  ;;  %s1147_s9 = sshll.u32 %s170_s23, 9 }
  0x37   : > { %2408 = sst [smem:[#allocation20_spill]] %s2407_s7  ;;  %s40_s10 = ssub.s32 %s1732_s21, %s2442_s6 }
  0x38   : > { %s42_s1 = sor.u32 %s41_s28, %s40_s10  ;;  %p118_p6 = scmp.eq.s32.totalorder %s40_s10, 0 }
  0x39   : > { %p43_p3 = scmp.eq.s32.totalorder %s42_s1, 0  ;;  %s1148_s24 = sshll.u32 %s1728_s20, 6 }
  0x3a   : > { %s2409_s4 = sadd.s32 1, %s1704_s14  ;;  %s1149_s29 = sshll.u32 %s1732_s21, 7 }
  0x3b   : > { %s1906_s12 = scalar_select %p118_p6, %s1704_s14, %s2409_s4  }
  0x3c   : > { %s1909_s26 = scalar_select %p43_p3, %s1716_s17, %s45_s8  }
  0x3d   : > { %s174_s15 = scalar_lea.vmem [#allocation2], %s1147_s9  ;;  %s180_s30 = sadd.s32 %s1149_s29, %s1148_s24 }
  0x3e   : > { %s183_s3 = sshll.u32 %s174_s15, 4  ;;  %s1150_s2 = sshll.u32 %s180_s30, 7  ;;  %s184_s3 = int_to_ptr.vmem [resolvable:$true] %s183_s3 }
  0x3f   : > { %p1916_p2 = pnand %p1431_p0, %p1886_p10  ;;  %s182_s4 = scalar_lea.hbm %s2370_s0, %s1150_s2 }
  0x40   : > { %s171_s10 = scalar_lea.sflag [#allocation3], %s170_s23  ;;  %s1567_s8 = scalar_lea.vmem %s184_s3, 8192 }
  0x41   : > { %p1556_p7 = pneg %p1916_p2  ;;  %p1568_p8 = scmp.ne.s32.totalorder %s184_s3, %s1567_s8 }
  0x42   : > { %s1741_s15 = smov [#allocation2]  }
  0x43   : > { %p1570_p4 = pnand %p1568_p8, %p1556_p7  ;;  %s1572_s29 = sshll.u32 %s1741_s15, 4  ;;  %s1573_s29 = int_to_ptr.vmem [resolvable:$false] %s1572_s29 }
  0x44   : > { %s1574_s30 = scalar_lea.vmem %s1573_s29, 16384  ;;  %p1575_p9 = scmp.lt.s32.totalorder %s184_s3, %s1573_s29 }
  0x45   : > { %p1571_p5 = pneg %p1570_p4  ;;  %p1576_p10 = scmp.lt.s32.totalorder %s1574_s30, %s1567_s8 }
  0x47   : > { %p1577_p11 = por %p1576_p10, %p1575_p9 }
  0x49   : > { %p1578_p0 = pnand %p1577_p11, %p1571_p5 }
  0x4b   : > { %1581 = shalt.err (!%p1578_p0)
}
  0x4c   : > { %s2411_s9 = smov 8   ;;  %s2412_s2 = smov 128  }
  0x4d   : > { %1422 = dma.hbm_to_vmem [thread:$0]  (!%p1916_p2), %s182_s4, 8192, %s184_s3, %s171_s10, %s2412_s2, %s2412_s2, %s2411_s9  }
  0x4e   : > { %195 = sbr.rel (%p1861_p12) target bundleno = 492 (0x1ec), region = 28  ;;  %s1933_s24 = sand.u32 (!%p1861_p12), 1, %s1712_s16  }
  0x4f   : > { %s1152_s11 = sshll.u32 (!%p1861_p12), %s1933_s24, 9  ;;  %s198_s23 = scalar_lea.sflag (!%p1861_p12), [#allocation3], %s1933_s24 }
  0x50   : > { %s1937_s28 = scalar_lea.vmem (!%p1861_p12), [#allocation2], %s1152_s11  ;;  %p2413_p6 = scmp.ne.s32.totalorder (!%p1861_p12), %s2396_s27, 0 }
  0x53   : > { %1679 = dma.done.wait (%p2413_p6), %s198_s23, 8192  }
  0x54   : > { %1681 = vsyncadd (%p2413_p6), %s198_s23, 4294959104 }
  0x55   : > { %1683 = dma.done.wait (%p1826_p1), [#allocation6], 2048  }
  0x56   : > { %1685 = vsyncadd (%p1826_p1), [#allocation6], 4294965248  ;;  %s230_s3 = sand.u32 1, %s1700_s13   ;;  %s1950_s7 = scalar_lea.vmem [#allocation7], %s1152_s11 }
  0x57   : > { %s1155_s5 = sshll.u32 %s230_s3, 1  ;;  %p1156_p12 = scmp.ne.s32.totalorder %s1720_s18, 0 }
  0x58   : > { %s1952_s1 = scalar_lea.vmem [#allocation8], %s1155_s5 }
  0x59   : > { %238 = sbr.rel (%p1156_p12) target bundleno = 96 (0x60), region = 40 }
  0x5e   : > { %v1742_v0 = vmov 0.0  }
  0x5f   : > { %239 = vst [vmem:[%s1952_s1] sm:$0x3] %v1742_v0 }
  0x60 PF: > { %v319_v1 = vld [vmem:[#allocation5 + $0x78] sm:$0xff]  ;;  %v318_v2 = vld [vmem:[#allocation5 + $0x70] sm:$0xff]  ;;  %v317_v3 = vld [vmem:[#allocation5 + $0x68] sm:$0xff]  ;;  %s1159_s25 = sshll.u32 %s1720_s18, 6  ;;  %s1160_s27 = sshll.u32 %s1724_s19, 7 }
  0x61   : > { %1245 = vmatprep.subr.mxu0 %v319_v1  ;;  %1373 = vmatprep.subr.mxu1 %v319_v1  ;;  %v316_v4 = vld [vmem:[#allocation5 + $0x60] sm:$0xff]  ;;  %v315_v6 = vld [vmem:[#allocation5 + $0x58] sm:$0xff]  ;;  %v314_v7 = vld [vmem:[#allocation5 + $0x50] sm:$0xff]  ;;  %s994_s18 = sadd.s32 %s1160_s27, %s1159_s25  ;;  %s997_s4 = sshll.u32 %s1950_s7, 4  ;;  %s2176_s4 = int_to_ptr.vmem [resolvable:$true] %s997_s4 }
  0x62   : > { %1246 = vmatpush3.msra.mxu0 %v319_v1  ;;  %1389 = vmatpush3.msra.mxu1 %v319_v1  ;;  %v240_v5 = vld [vmem:[%s1937_s28] sm:$0xff]  ;;  %v313_v8 = vld [vmem:[#allocation5 + $0x48] sm:$0xff]  ;;  %v311_v10 = vld [vmem:[#allocation5 + $0x38] sm:$0xff]  ;;  %s1161_s10 = sshll.u32 %s994_s18, 7  ;;  %s2415_s30 = sld [smem:[#allocation22_spill]] }
  0x63   : > { %1247 = vmatprep.subr.mxu0 %v318_v2  ;;  %1374 = vmatprep.subr.mxu1 %v318_v2  ;;  %v312_v9 = vld [vmem:[#allocation5 + $0x40] sm:$0xff]  ;;  %v310_v11 = vld [vmem:[#allocation5 + $0x30] sm:$0xff]  ;;  %v309_v12 = vld [vmem:[#allocation5 + $0x28] sm:$0xff]  ;;  %s977_s2 = scalar_lea.sflag [#allocation4], %s1933_s24  ;;  %s1582_s11 = scalar_lea.vmem %s2176_s4, 8192 }
  0x64   : > { %1248 = vmatpush3.msra.mxu0 %v318_v2  ;;  %1390 = vmatpush3.msra.mxu1 %v318_v2  ;;  %v308_v13 = vld [vmem:[#allocation5 + $0x20] sm:$0xff]  ;;  %v307_v14 = vld [vmem:[#allocation5 + $0x18] sm:$0xff]  ;;  %v306_v15 = vld [vmem:[#allocation5 + $0x10] sm:$0xff]  ;;  %p1583_p1 = scmp.ne.s32.totalorder %s2176_s4, %s1582_s11  ;;  %s1743_s23 = smov [#allocation7]  }
  0x65   : > { %1249 = vmatprep.subr.mxu0 %v317_v3  ;;  %1375 = vmatprep.subr.mxu1 %v317_v3  ;;  %v305_v16 = vld [vmem:[#allocation5 + $0x8] sm:$0xff]  ;;  %v304_v17 = vld [vmem:[#allocation5] sm:$0xff]  ;;  %v242_v19 = vld [vmem:[%s1937_s28 + $0x10] sm:$0xff] }
  0x66   : > { %1250 = vmatpush3.msra.mxu0 %v317_v3  ;;  %1277 = vmatprep.mubr.f32.mxu0 %v240_v5  ;;  %v241_v18 = vld [vmem:[%s1937_s28 + $0x8] sm:$0xff]  ;;  %v272_v20 = vld [vmem:[%s1937_s28 + $0x100] sm:$0xff]  ;;  %v274_v22 = vld [vmem:[%s1937_s28 + $0x110] sm:$0xff]  ;;  %p1584_p3 = pnand %p1583_p1, %p1892_p13 }
  0x67   : > { %1251 = vmatprep.subr.mxu0 %v316_v4  ;;  %1391 = vmatpush3.msra.mxu1 %v317_v3  ;;  %v273_v21 = vld [vmem:[%s1937_s28 + $0x108] sm:$0xff]  ;;  %v243_v23 = vld [vmem:[%s1937_s28 + $0x18] sm:$0xff]  ;;  %v244_v24 = vld [vmem:[%s1937_s28 + $0x20] sm:$0xff] }
  0x68   : > { %1252 = vmatpush3.msra.mxu0 %v316_v4  ;;  %1376 = vmatprep.subr.mxu1 %v316_v4  ;;  %v275_v25 = vld [vmem:[%s1937_s28 + $0x118] sm:$0xff]  ;;  %v276_v26 = vld [vmem:[%s1937_s28 + $0x120] sm:$0xff]  ;;  %v245_v27 = vld [vmem:[%s1937_s28 + $0x28] sm:$0xff]  ;;  %s2184_s9 = scalar_lea.hbm %s2415_s30, %s1161_s10  ;;  %p1585_p2 = pneg %p1584_p3 }
  0x69   : > { %1253 = vmatprep.subr.mxu0 %v315_v6  ;;  %1392 = vmatpush3.msra.mxu1 %v316_v4  ;;  %v246_v28 = vld [vmem:[%s1937_s28 + $0x30] sm:$0xff]  ;;  %v277_v29 = vld [vmem:[%s1937_s28 + $0x128] sm:$0xff]  ;;  %v247_v31 = vld [vmem:[%s1937_s28 + $0x38] sm:$0xff] }
  0x6a   : > { %1254 = vmatpush3.msra.mxu0 %v315_v6  ;;  %1377 = vmatprep.subr.mxu1 %v315_v6  ;;  %v278_v30 = vld [vmem:[%s1937_s28 + $0x130] sm:$0xff]  ;;  %v248_v32 = vld [vmem:[%s1937_s28 + $0x40] sm:$0xff]  ;;  %v279_v33 = vld [vmem:[%s1937_s28 + $0x138] sm:$0xff] }
  0x6b   : > { %1255 = vmatprep.subr.mxu0 %v314_v7  ;;  %1393 = vmatpush3.msra.mxu1 %v315_v6  ;;  %v280_v34 = vld [vmem:[%s1937_s28 + $0x140] sm:$0xff]  ;;  %v249_v35 = vld [vmem:[%s1937_s28 + $0x48] sm:$0xff]  ;;  %v250_v36 = vld [vmem:[%s1937_s28 + $0x50] sm:$0xff] }
  0x6c   : > { %1256 = vmatpush3.msra.mxu0 %v314_v7  ;;  %1378 = vmatprep.subr.mxu1 %v314_v7  ;;  %v281_v37 = vld [vmem:[%s1937_s28 + $0x148] sm:$0xff]  ;;  %v282_v38 = vld [vmem:[%s1937_s28 + $0x150] sm:$0xff]  ;;  %v251_v39 = vld [vmem:[%s1937_s28 + $0x58] sm:$0xff] }
  0x6d   : > { %1257 = vmatprep.subr.mxu0 %v313_v8  ;;  %1394 = vmatpush3.msra.mxu1 %v314_v7  ;;  %v252_v40 = vld [vmem:[%s1937_s28 + $0x60] sm:$0xff]  ;;  %v283_v41 = vld [vmem:[%s1937_s28 + $0x158] sm:$0xff]  ;;  %v253_v43 = vld [vmem:[%s1937_s28 + $0x68] sm:$0xff] }
  0x6e   : > { %1258 = vmatpush3.msra.mxu0 %v313_v8  ;;  %1379 = vmatprep.subr.mxu1 %v313_v8  ;;  %v284_v42 = vld [vmem:[%s1937_s28 + $0x160] sm:$0xff]  ;;  %v254_v44 = vld [vmem:[%s1937_s28 + $0x70] sm:$0xff]  ;;  %v285_v45 = vld [vmem:[%s1937_s28 + $0x168] sm:$0xff] }
  0x6f   : > { %1259 = vmatprep.subr.mxu0 %v312_v9  ;;  %1395 = vmatpush3.msra.mxu1 %v313_v8  ;;  %v286_v46 = vld [vmem:[%s1937_s28 + $0x170] sm:$0xff]  ;;  %v255_v47 = vld [vmem:[%s1937_s28 + $0x78] sm:$0xff]  ;;  %v256_v48 = vld [vmem:[%s1937_s28 + $0x80] sm:$0xff] }
  0x70   : > { %1260 = vmatpush3.msra.mxu0 %v312_v9  ;;  %1380 = vmatprep.subr.mxu1 %v312_v9  ;;  %v287_v49 = vld [vmem:[%s1937_s28 + $0x178] sm:$0xff]  ;;  %v288_v50 = vld [vmem:[%s1937_s28 + $0x180] sm:$0xff]  ;;  %v257_v51 = vld [vmem:[%s1937_s28 + $0x88] sm:$0xff] }
  0x71   : > { %1261 = vmatprep.subr.mxu0 %v311_v10  ;;  %1396 = vmatpush3.msra.mxu1 %v312_v9  ;;  %v258_v52 = vld [vmem:[%s1937_s28 + $0x90] sm:$0xff]  ;;  %v289_v53 = vld [vmem:[%s1937_s28 + $0x188] sm:$0xff]  ;;  %v259_v55 = vld [vmem:[%s1937_s28 + $0x98] sm:$0xff] }
  0x72   : > { %1262 = vmatpush3.msra.mxu0 %v311_v10  ;;  %1381 = vmatprep.subr.mxu1 %v311_v10  ;;  %v290_v54 = vld [vmem:[%s1937_s28 + $0x190] sm:$0xff]  ;;  %v260_v56 = vld [vmem:[%s1937_s28 + $0xa0] sm:$0xff]  ;;  %v291_v57 = vld [vmem:[%s1937_s28 + $0x198] sm:$0xff] }
  0x73   : > { %1263 = vmatprep.subr.mxu0 %v310_v11  ;;  %1397 = vmatpush3.msra.mxu1 %v311_v10  ;;  %v292_v58 = vld [vmem:[%s1937_s28 + $0x1a0] sm:$0xff]  ;;  %v261_v59 = vld [vmem:[%s1937_s28 + $0xa8] sm:$0xff]  ;;  %v262_v60 = vld [vmem:[%s1937_s28 + $0xb0] sm:$0xff] }
  0x74   : > { %1264 = vmatpush3.msra.mxu0 %v310_v11  ;;  %1382 = vmatprep.subr.mxu1 %v310_v11  ;;  %v293_v61 = vld [vmem:[%s1937_s28 + $0x1a8] sm:$0xff]  ;;  %v294_v62 = vld [vmem:[%s1937_s28 + $0x1b0] sm:$0xff]  ;;  %v263_v63 = vld [vmem:[%s1937_s28 + $0xb8] sm:$0xff] }
  0x75   : > { %1265 = vmatprep.subr.mxu0 %v309_v12  ;;  %1398 = vmatpush3.msra.mxu1 %v310_v11  ;;  %v264_v0 = vld [vmem:[%s1937_s28 + $0xc0] sm:$0xff]  ;;  %v295_v1 = vld [vmem:[%s1937_s28 + $0x1b8] sm:$0xff]  ;;  %v265_v3 = vld [vmem:[%s1937_s28 + $0xc8] sm:$0xff] }
  0x76   : > { %1266 = vmatpush3.msra.mxu0 %v309_v12  ;;  %1383 = vmatprep.subr.mxu1 %v309_v12  ;;  %v296_v2 = vld [vmem:[%s1937_s28 + $0x1c0] sm:$0xff]  ;;  %v266_v4 = vld [vmem:[%s1937_s28 + $0xd0] sm:$0xff]  ;;  %v297_v5 = vld [vmem:[%s1937_s28 + $0x1c8] sm:$0xff] }
  0x77   : > { %1267 = vmatprep.subr.mxu0 %v308_v13  ;;  %1399 = vmatpush3.msra.mxu1 %v309_v12  ;;  %v298_v6 = vld [vmem:[%s1937_s28 + $0x1d0] sm:$0xff]  ;;  %v267_v7 = vld [vmem:[%s1937_s28 + $0xd8] sm:$0xff]  ;;  %v268_v8 = vld [vmem:[%s1937_s28 + $0xe0] sm:$0xff] }
  0x78   : > { %1268 = vmatpush3.msra.mxu0 %v308_v13  ;;  %1384 = vmatprep.subr.mxu1 %v308_v13  ;;  %v299_v9 = vld [vmem:[%s1937_s28 + $0x1d8] sm:$0xff]  ;;  %v300_v10 = vld [vmem:[%s1937_s28 + $0x1e0] sm:$0xff]  ;;  %v269_v11 = vld [vmem:[%s1937_s28 + $0xe8] sm:$0xff] }
  0x79   : > { %1269 = vmatprep.subr.mxu0 %v307_v14  ;;  %1400 = vmatpush3.msra.mxu1 %v308_v13  ;;  %v270_v12 = vld [vmem:[%s1937_s28 + $0xf0] sm:$0xff]  ;;  %v301_v13 = vld [vmem:[%s1937_s28 + $0x1e8] sm:$0xff] }
  0x7a   : > { %1270 = vmatpush3.msra.mxu0 %v307_v14  ;;  %1385 = vmatprep.subr.mxu1 %v307_v14 }
  0x7b   : > { %1271 = vmatprep.subr.mxu0 %v306_v15  ;;  %1401 = vmatpush3.msra.mxu1 %v307_v14  ;;  %v302_v14 = vld [vmem:[%s1937_s28 + $0x1f0] sm:$0xff] }
  0x7c   : > { %1272 = vmatpush3.msra.mxu0 %v306_v15  ;;  %1386 = vmatprep.subr.mxu1 %v306_v15 }
  0x7d   : > { %1273 = vmatprep.subr.mxu0 %v305_v16  ;;  %1402 = vmatpush3.msra.mxu1 %v306_v15  ;;  %v271_v15 = vld [vmem:[%s1937_s28 + $0xf8] sm:$0xff] }
  0x7e   : > { %1274 = vmatpush3.msra.mxu0 %v305_v16  ;;  %1387 = vmatprep.subr.mxu1 %v305_v16 }
  0x7f   : > { %1275 = vmatprep.subr.mxu0 %v304_v17  ;;  %1403 = vmatpush3.msra.mxu1 %v305_v16  ;;  %v303_v16 = vld [vmem:[%s1937_s28 + $0x1f8] sm:$0xff]  ;;  %s1586_s28 = sshll.u32 %s1743_s23, 4  ;;  %s1587_s28 = int_to_ptr.vmem [resolvable:$false] %s1586_s28 }
  0x80   : > { %1276 = vmatpush3.msra.mxu0 %v304_v17  ;;  %1388 = vmatprep.subr.mxu1 %v304_v17  ;;  %s1588_s5 = scalar_lea.vmem %s1587_s28, 16384  ;;  %p1589_p7 = scmp.lt.s32.totalorder %s2176_s4, %s1587_s28 }
  0x81   : > { %1278 = vmatmul.mubr.f32.vlgmr.msra.gmra.mxu0 %v241_v18  ;;  %1404 = vmatpush3.msra.mxu1 %v304_v17  ;;  %p1590_p8 = scmp.lt.s32.totalorder %s1588_s5, %s1582_s11 }
  0x82   : > { %1280 = vmatprep.mubr.f32.mxu0 %v242_v19  ;;  %1325 = vmatprep.mubr.f32.mxu1 %v272_v20 }
  0x83   : > { %1326 = vmatmul.mubr.f32.vlgmr.msra.gmra.mxu1 %v273_v21  ;;  %p1591_p4 = por %p1590_p8, %p1589_p7 }
  0x84   : > { %1328 = vmatprep.mubr.f32.mxu1 %v274_v22 }
  0x85   : > { %1281 = vmatmul.mubr.f32.gmra.mxu0 %v243_v23  ;;  %p1592_p5 = pnand %p1591_p4, %p1585_p2 }
  0x86   : > { %1283 = vmatprep.mubr.f32.mxu0 %v244_v24 }
  0x87   : > { %1329 = vmatmul.mubr.f32.gmra.mxu1 %v275_v25 }
  0x88   : > { %1331 = vmatprep.mubr.f32.mxu1 %v276_v26 }
  0x89   : > { %1284 = vmatmul.mubr.f32.gmra.mxu0 %v245_v27 }
  0x8a   : > { %1286 = vmatprep.mubr.f32.mxu0 %v246_v28 }
  0x8b   : > { %1332 = vmatmul.mubr.f32.gmra.mxu1 %v277_v29 }
  0x8c   : > { %1334 = vmatprep.mubr.f32.mxu1 %v278_v30 }
  0x8d   : > { %1287 = vmatmul.mubr.f32.gmra.mxu0 %v247_v31 }
  0x8e   : > { %1289 = vmatprep.mubr.f32.mxu0 %v248_v32 }
  0x8f   : > { %1335 = vmatmul.mubr.f32.gmra.mxu1 %v279_v33 }
  0x90   : > { %1337 = vmatprep.mubr.f32.mxu1 %v280_v34 }
  0x91   : > { %1290 = vmatmul.mubr.f32.gmra.mxu0 %v249_v35 }
  0x92   : > { %1292 = vmatprep.mubr.f32.mxu0 %v250_v36 }
  0x93   : > { %1338 = vmatmul.mubr.f32.gmra.mxu1 %v281_v37 }
  0x94   : > { %1340 = vmatprep.mubr.f32.mxu1 %v282_v38 }
  0x95   : > { %1293 = vmatmul.mubr.f32.gmra.mxu0 %v251_v39 }
  0x96   : > { %1295 = vmatprep.mubr.f32.mxu0 %v252_v40 }
  0x97   : > { %1341 = vmatmul.mubr.f32.gmra.mxu1 %v283_v41 }
  0x98   : > { %1343 = vmatprep.mubr.f32.mxu1 %v284_v42 }
  0x99   : > { %1296 = vmatmul.mubr.f32.gmra.mxu0 %v253_v43 }
  0x9a   : > { %1298 = vmatprep.mubr.f32.mxu0 %v254_v44 }
  0x9b   : > { %1344 = vmatmul.mubr.f32.gmra.mxu1 %v285_v45 }
  0x9c   : > { %1346 = vmatprep.mubr.f32.mxu1 %v286_v46 }
  0x9d   : > { %1299 = vmatmul.mubr.f32.gmra.mxu0 %v255_v47 }
  0x9e   : > { %1301 = vmatprep.mubr.f32.mxu0 %v256_v48 }
  0x9f   : > { %1347 = vmatmul.mubr.f32.gmra.mxu1 %v287_v49 }
  0xa0   : > { %1349 = vmatprep.mubr.f32.mxu1 %v288_v50 }
  0xa1   : > { %1302 = vmatmul.mubr.f32.gmra.mxu0 %v257_v51 }
  0xa2   : > { %1304 = vmatprep.mubr.f32.mxu0 %v258_v52 }
  0xa3   : > { %1350 = vmatmul.mubr.f32.gmra.mxu1 %v289_v53 }
  0xa4   : > { %1352 = vmatprep.mubr.f32.mxu1 %v290_v54 }
  0xa5   : > { %1305 = vmatmul.mubr.f32.gmra.mxu0 %v259_v55 }
  0xa6   : > { %1307 = vmatprep.mubr.f32.mxu0 %v260_v56 }
  0xa7   : > { %1353 = vmatmul.mubr.f32.gmra.mxu1 %v291_v57 }
  0xa8   : > { %1355 = vmatprep.mubr.f32.mxu1 %v292_v58 }
  0xa9   : > { %1308 = vmatmul.mubr.f32.gmra.mxu0 %v261_v59 }
  0xaa   : > { %1310 = vmatprep.mubr.f32.mxu0 %v262_v60 }
  0xab   : > { %1356 = vmatmul.mubr.f32.gmra.mxu1 %v293_v61 }
  0xac   : > { %1358 = vmatprep.mubr.f32.mxu1 %v294_v62 }
  0xad   : > { %1311 = vmatmul.mubr.f32.gmra.mxu0 %v263_v63 }
  0xae   : > { %1313 = vmatprep.mubr.f32.mxu0 %v264_v0 }
  0xaf   : > { %1359 = vmatmul.mubr.f32.gmra.mxu1 %v295_v1 }
  0xb0   : > { %1361 = vmatprep.mubr.f32.mxu1 %v296_v2 }
  0xb1   : > { %1314 = vmatmul.mubr.f32.gmra.mxu0 %v265_v3 }
  0xb2   : > { %1316 = vmatprep.mubr.f32.mxu0 %v266_v4 }
  0xb3   : > { %1362 = vmatmul.mubr.f32.gmra.mxu1 %v297_v5 }
  0xb4   : > { %1364 = vmatprep.mubr.f32.mxu1 %v298_v6 }
  0xb5   : > { %1317 = vmatmul.mubr.f32.gmra.mxu0 %v267_v7 }
  0xb6   : > { %1319 = vmatprep.mubr.f32.mxu0 %v268_v8 }
  0xb7   : > { %1365 = vmatmul.mubr.f32.gmra.mxu1 %v299_v9 }
  0xb8   : > { %1367 = vmatprep.mubr.f32.mxu1 %v300_v10 }
  0xb9   : > { %1320 = vmatmul.mubr.f32.gmra.mxu0 %v269_v11 }
  0xba   : > { %1322 = vmatprep.mubr.f32.mxu0 %v270_v12 }
  0xbb   : > { %1368 = vmatmul.mubr.f32.gmra.mxu1 %v301_v13 }
  0xbc   : > { %1370 = vmatprep.mubr.f32.mxu1 %v302_v14 }
  0xbd   : > { %1323 = vmatmul.mubr.f32.gmra.mxu0 %v271_v15 }
  0xbf   : > { %1371 = vmatmul.mubr.f32.gmra.mxu1 %v303_v16 }
 0x141   : > { %v1279_v17 = vpop.f32.mrf.mxu0 }
 0x142   : > { %706 = vst [vmem:[%s1950_s7 + $0x8] sm:$0xff] %v1279_v17  ;;  %v839_v23 = vmul.f32 %v1279_v17, %v1279_v17 }
 0x143   : > { %v386_v18 = vpop.f32.mrf.mxu0  ;;  %v2021_v19 = vpop.f32.mrf.mxu1 }
 0x144   : > { %705 = vst [vmem:[%s1950_s7] sm:$0xff] %v386_v18  ;;  %v838_v20 = vmul.f32 %v386_v18, %v386_v18  ;;  %738 = vst [vmem:[%s1950_s7 + $0x108] sm:$0xff] %v2021_v19  ;;  %v769_v24 = vadd.f32 %v1279_v17, %v386_v18 }
 0x145   : > { %v1282_v21 = vpop.f32.mrf.mxu0  ;;  %v2026_v22 = vpop.f32.mrf.mxu1 }
 0x146   : > { %708 = vst [vmem:[%s1950_s7 + $0x18] sm:$0xff] %v1282_v21  ;;  %737 = vst [vmem:[%s1950_s7 + $0x100] sm:$0xff] %v2026_v22  ;;  %v902_v27 = vadd.f32 %v839_v23, %v838_v20  ;;  %v841_v32 = vmul.f32 %v1282_v21, %v1282_v21 }
 0x147   : > { %v396_v25 = vpop.f32.mrf.mxu0  ;;  %v2031_v26 = vpop.f32.mrf.mxu1 }
 0x148   : > { %707 = vst [vmem:[%s1950_s7 + $0x10] sm:$0xff] %v396_v25  ;;  %v770_v28 = vadd.f32 %v769_v24, %v396_v25  ;;  %v840_v29 = vmul.f32 %v396_v25, %v396_v25  ;;  %740 = vst [vmem:[%s1950_s7 + $0x118] sm:$0xff] %v2031_v26 }
 0x149   : > { %v1285_v30 = vpop.f32.mrf.mxu0  ;;  %v2036_v31 = vpop.f32.mrf.mxu1 }
 0x14a   : > { %v903_v33 = vadd.f32 %v902_v27, %v840_v29  ;;  %710 = vst [vmem:[%s1950_s7 + $0x28] sm:$0xff] %v1285_v30  ;;  %v771_v34 = vadd.f32 %v1282_v21, %v770_v28  ;;  %739 = vst [vmem:[%s1950_s7 + $0x110] sm:$0xff] %v2036_v31  ;;  %v843_v42 = vmul.f32 %v1285_v30, %v1285_v30 }
 0x14b   : > { %v406_v35 = vpop.f32.mrf.mxu0  ;;  %v2041_v36 = vpop.f32.mrf.mxu1 }
 0x14c   : > { %709 = vst [vmem:[%s1950_s7 + $0x20] sm:$0xff] %v406_v35  ;;  %v772_v37 = vadd.f32 %v771_v34, %v406_v35  ;;  %v842_v38 = vmul.f32 %v406_v35, %v406_v35  ;;  %v904_v39 = vadd.f32 %v903_v33, %v841_v32  ;;  %742 = vst [vmem:[%s1950_s7 + $0x128] sm:$0xff] %v2041_v36 }
 0x14d   : > { %v1288_v40 = vpop.f32.mrf.mxu0  ;;  %v2046_v41 = vpop.f32.mrf.mxu1 }
 0x14e   : > { %v905_v43 = vadd.f32 %v904_v39, %v842_v38  ;;  %712 = vst [vmem:[%s1950_s7 + $0x38] sm:$0xff] %v1288_v40  ;;  %v773_v44 = vadd.f32 %v1285_v30, %v772_v37  ;;  %741 = vst [vmem:[%s1950_s7 + $0x120] sm:$0xff] %v2046_v41  ;;  %v845_v52 = vmul.f32 %v1288_v40, %v1288_v40 }
 0x14f   : > { %v416_v45 = vpop.f32.mrf.mxu0  ;;  %v2051_v46 = vpop.f32.mrf.mxu1 }
 0x150   : > { %711 = vst [vmem:[%s1950_s7 + $0x30] sm:$0xff] %v416_v45  ;;  %v774_v47 = vadd.f32 %v773_v44, %v416_v45  ;;  %v844_v48 = vmul.f32 %v416_v45, %v416_v45  ;;  %v906_v49 = vadd.f32 %v905_v43, %v843_v42  ;;  %744 = vst [vmem:[%s1950_s7 + $0x138] sm:$0xff] %v2051_v46 }
 0x151   : > { %v1291_v50 = vpop.f32.mrf.mxu0  ;;  %v2056_v51 = vpop.f32.mrf.mxu1 }
 0x152   : > { %v907_v53 = vadd.f32 %v906_v49, %v844_v48  ;;  %714 = vst [vmem:[%s1950_s7 + $0x48] sm:$0xff] %v1291_v50  ;;  %v775_v54 = vadd.f32 %v1288_v40, %v774_v47  ;;  %743 = vst [vmem:[%s1950_s7 + $0x130] sm:$0xff] %v2056_v51  ;;  %v847_v62 = vmul.f32 %v1291_v50, %v1291_v50 }
 0x153   : > { %v426_v55 = vpop.f32.mrf.mxu0  ;;  %v2061_v56 = vpop.f32.mrf.mxu1 }
 0x154   : > { %713 = vst [vmem:[%s1950_s7 + $0x40] sm:$0xff] %v426_v55  ;;  %v776_v57 = vadd.f32 %v775_v54, %v426_v55  ;;  %v846_v58 = vmul.f32 %v426_v55, %v426_v55  ;;  %v908_v59 = vadd.f32 %v907_v53, %v845_v52  ;;  %746 = vst [vmem:[%s1950_s7 + $0x148] sm:$0xff] %v2061_v56 }
 0x155   : > { %v1294_v60 = vpop.f32.mrf.mxu0  ;;  %v2066_v61 = vpop.f32.mrf.mxu1 }
 0x156   : > { %v909_v63 = vadd.f32 %v908_v59, %v846_v58  ;;  %716 = vst [vmem:[%s1950_s7 + $0x58] sm:$0xff] %v1294_v60  ;;  %v777_v0 = vadd.f32 %v1291_v50, %v776_v57  ;;  %745 = vst [vmem:[%s1950_s7 + $0x140] sm:$0xff] %v2066_v61  ;;  %v849_v8 = vmul.f32 %v1294_v60, %v1294_v60 }
 0x157   : > { %v436_v1 = vpop.f32.mrf.mxu0  ;;  %v2071_v2 = vpop.f32.mrf.mxu1 }
 0x158   : > { %715 = vst [vmem:[%s1950_s7 + $0x50] sm:$0xff] %v436_v1  ;;  %v778_v3 = vadd.f32 %v777_v0, %v436_v1  ;;  %v848_v4 = vmul.f32 %v436_v1, %v436_v1  ;;  %v910_v5 = vadd.f32 %v909_v63, %v847_v62  ;;  %748 = vst [vmem:[%s1950_s7 + $0x158] sm:$0xff] %v2071_v2 }
 0x159   : > { %v1297_v6 = vpop.f32.mrf.mxu0  ;;  %v2076_v7 = vpop.f32.mrf.mxu1 }
 0x15a   : > { %v911_v9 = vadd.f32 %v910_v5, %v848_v4  ;;  %718 = vst [vmem:[%s1950_s7 + $0x68] sm:$0xff] %v1297_v6  ;;  %v779_v10 = vadd.f32 %v1294_v60, %v778_v3  ;;  %747 = vst [vmem:[%s1950_s7 + $0x150] sm:$0xff] %v2076_v7  ;;  %v851_v18 = vmul.f32 %v1297_v6, %v1297_v6 }
 0x15b   : > { %v446_v11 = vpop.f32.mrf.mxu0  ;;  %v2081_v12 = vpop.f32.mrf.mxu1 }
 0x15c   : > { %717 = vst [vmem:[%s1950_s7 + $0x60] sm:$0xff] %v446_v11  ;;  %v780_v13 = vadd.f32 %v779_v10, %v446_v11  ;;  %v850_v14 = vmul.f32 %v446_v11, %v446_v11  ;;  %v912_v15 = vadd.f32 %v911_v9, %v849_v8  ;;  %750 = vst [vmem:[%s1950_s7 + $0x168] sm:$0xff] %v2081_v12 }
 0x15d   : > { %v1300_v16 = vpop.f32.mrf.mxu0  ;;  %v2086_v17 = vpop.f32.mrf.mxu1 }
 0x15e   : > { %v913_v20 = vadd.f32 %v912_v15, %v850_v14  ;;  %720 = vst [vmem:[%s1950_s7 + $0x78] sm:$0xff] %v1300_v16  ;;  %v781_v21 = vadd.f32 %v1297_v6, %v780_v13  ;;  %749 = vst [vmem:[%s1950_s7 + $0x160] sm:$0xff] %v2086_v17  ;;  %v853_v32 = vmul.f32 %v1300_v16, %v1300_v16 }
 0x15f   : > { %v456_v23 = vpop.f32.mrf.mxu0  ;;  %v2091_v24 = vpop.f32.mrf.mxu1 }
 0x160   : > { %719 = vst [vmem:[%s1950_s7 + $0x70] sm:$0xff] %v456_v23  ;;  %v782_v25 = vadd.f32 %v781_v21, %v456_v23  ;;  %v852_v27 = vmul.f32 %v456_v23, %v456_v23  ;;  %v914_v28 = vadd.f32 %v913_v20, %v851_v18  ;;  %752 = vst [vmem:[%s1950_s7 + $0x178] sm:$0xff] %v2091_v24 }
 0x161   : > { %v1303_v29 = vpop.f32.mrf.mxu0  ;;  %v2096_v30 = vpop.f32.mrf.mxu1 }
 0x162   : > { %v915_v33 = vadd.f32 %v914_v28, %v852_v27  ;;  %722 = vst [vmem:[%s1950_s7 + $0x88] sm:$0xff] %v1303_v29  ;;  %v783_v34 = vadd.f32 %v1300_v16, %v782_v25  ;;  %751 = vst [vmem:[%s1950_s7 + $0x170] sm:$0xff] %v2096_v30  ;;  %v855_v44 = vmul.f32 %v1303_v29, %v1303_v29 }
 0x163   : > { %v466_v35 = vpop.f32.mrf.mxu0  ;;  %v2101_v37 = vpop.f32.mrf.mxu1 }
 0x164   : > { %721 = vst [vmem:[%s1950_s7 + $0x80] sm:$0xff] %v466_v35  ;;  %v784_v38 = vadd.f32 %v783_v34, %v466_v35  ;;  %v854_v39 = vmul.f32 %v466_v35, %v466_v35  ;;  %v916_v40 = vadd.f32 %v915_v33, %v853_v32  ;;  %754 = vst [vmem:[%s1950_s7 + $0x188] sm:$0xff] %v2101_v37 }
 0x165   : > { %v1306_v42 = vpop.f32.mrf.mxu0  ;;  %v2106_v43 = vpop.f32.mrf.mxu1 }
 0x166   : > { %v917_v45 = vadd.f32 %v916_v40, %v854_v39  ;;  %724 = vst [vmem:[%s1950_s7 + $0x98] sm:$0xff] %v1306_v42  ;;  %v785_v47 = vadd.f32 %v1303_v29, %v784_v38  ;;  %753 = vst [vmem:[%s1950_s7 + $0x180] sm:$0xff] %v2106_v43  ;;  %v857_v57 = vmul.f32 %v1306_v42, %v1306_v42 }
 0x167   : > { %v476_v48 = vpop.f32.mrf.mxu0  ;;  %v2111_v49 = vpop.f32.mrf.mxu1 }
 0x168   : > { %723 = vst [vmem:[%s1950_s7 + $0x90] sm:$0xff] %v476_v48  ;;  %v786_v50 = vadd.f32 %v785_v47, %v476_v48  ;;  %v856_v52 = vmul.f32 %v476_v48, %v476_v48  ;;  %v918_v53 = vadd.f32 %v917_v45, %v855_v44  ;;  %756 = vst [vmem:[%s1950_s7 + $0x198] sm:$0xff] %v2111_v49 }
 0x169   : > { %v1309_v54 = vpop.f32.mrf.mxu0  ;;  %v2116_v55 = vpop.f32.mrf.mxu1 }
 0x16a   : > { %v919_v58 = vadd.f32 %v918_v53, %v856_v52  ;;  %726 = vst [vmem:[%s1950_s7 + $0xa8] sm:$0xff] %v1309_v54  ;;  %v787_v59 = vadd.f32 %v1306_v42, %v786_v50  ;;  %755 = vst [vmem:[%s1950_s7 + $0x190] sm:$0xff] %v2116_v55  ;;  %v859_v5 = vmul.f32 %v1309_v54, %v1309_v54 }
 0x16b   : > { %v486_v60 = vpop.f32.mrf.mxu0  ;;  %v2121_v62 = vpop.f32.mrf.mxu1 }
 0x16c   : > { %725 = vst [vmem:[%s1950_s7 + $0xa0] sm:$0xff] %v486_v60  ;;  %v788_v63 = vadd.f32 %v787_v59, %v486_v60  ;;  %v858_v0 = vmul.f32 %v486_v60, %v486_v60  ;;  %v920_v1 = vadd.f32 %v919_v58, %v857_v57  ;;  %758 = vst [vmem:[%s1950_s7 + $0x1a8] sm:$0xff] %v2121_v62 }
 0x16d   : > { %v1312_v3 = vpop.f32.mrf.mxu0  ;;  %v2126_v4 = vpop.f32.mrf.mxu1 }
 0x16e   : > { %v921_v6 = vadd.f32 %v920_v1, %v858_v0  ;;  %728 = vst [vmem:[%s1950_s7 + $0xb8] sm:$0xff] %v1312_v3  ;;  %v789_v8 = vadd.f32 %v1309_v54, %v788_v63  ;;  %757 = vst [vmem:[%s1950_s7 + $0x1a0] sm:$0xff] %v2126_v4  ;;  %v861_v18 = vmul.f32 %v1312_v3, %v1312_v3 }
 0x16f   : > { %v496_v9 = vpop.f32.mrf.mxu0  ;;  %v2131_v10 = vpop.f32.mrf.mxu1 }
 0x170   : > { %727 = vst [vmem:[%s1950_s7 + $0xb0] sm:$0xff] %v496_v9  ;;  %v790_v11 = vadd.f32 %v789_v8, %v496_v9  ;;  %v860_v13 = vmul.f32 %v496_v9, %v496_v9  ;;  %v922_v14 = vadd.f32 %v921_v6, %v859_v5  ;;  %760 = vst [vmem:[%s1950_s7 + $0x1b8] sm:$0xff] %v2131_v10 }
 0x171   : > { %v1315_v15 = vpop.f32.mrf.mxu0  ;;  %v2136_v16 = vpop.f32.mrf.mxu1 }
 0x172   : > { %v923_v20 = vadd.f32 %v922_v14, %v860_v13  ;;  %730 = vst [vmem:[%s1950_s7 + $0xc8] sm:$0xff] %v1315_v15  ;;  %v791_v21 = vadd.f32 %v1312_v3, %v790_v11  ;;  %759 = vst [vmem:[%s1950_s7 + $0x1b0] sm:$0xff] %v2136_v16  ;;  %v863_v34 = vmul.f32 %v1315_v15, %v1315_v15 }
 0x173   : > { %v506_v23 = vpop.f32.mrf.mxu0  ;;  %v2141_v25 = vpop.f32.mrf.mxu1 }
 0x174   : > { %729 = vst [vmem:[%s1950_s7 + $0xc0] sm:$0xff] %v506_v23  ;;  %v792_v27 = vadd.f32 %v791_v21, %v506_v23  ;;  %v862_v28 = vmul.f32 %v506_v23, %v506_v23  ;;  %v924_v29 = vadd.f32 %v923_v20, %v861_v18  ;;  %762 = vst [vmem:[%s1950_s7 + $0x1c8] sm:$0xff] %v2141_v25 }
 0x175   : > { %v1318_v32 = vpop.f32.mrf.mxu0  ;;  %v2146_v33 = vpop.f32.mrf.mxu1 }
 0x176   : > { %v925_v35 = vadd.f32 %v924_v29, %v862_v28  ;;  %732 = vst [vmem:[%s1950_s7 + $0xd8] sm:$0xff] %v1318_v32  ;;  %v793_v38 = vadd.f32 %v1315_v15, %v792_v27  ;;  %761 = vst [vmem:[%s1950_s7 + $0x1c0] sm:$0xff] %v2146_v33  ;;  %v865_v50 = vmul.f32 %v1318_v32, %v1318_v32 }
 0x177   : > { %v516_v39 = vpop.f32.mrf.mxu0  ;;  %v2151_v40 = vpop.f32.mrf.mxu1 }
 0x178   : > { %731 = vst [vmem:[%s1950_s7 + $0xd0] sm:$0xff] %v516_v39  ;;  %v794_v42 = vadd.f32 %v793_v38, %v516_v39  ;;  %v864_v44 = vmul.f32 %v516_v39, %v516_v39  ;;  %v926_v45 = vadd.f32 %v925_v35, %v863_v34  ;;  %764 = vst [vmem:[%s1950_s7 + $0x1d8] sm:$0xff] %v2151_v40 }
 0x179   : > { %v1321_v47 = vpop.f32.mrf.mxu0  ;;  %v2158_v48 = vpop.f32.mrf.mxu1 }
 0x17a   : > { %v927_v52 = vadd.f32 %v926_v45, %v864_v44  ;;  %734 = vst [vmem:[%s1950_s7 + $0xe8] sm:$0xff] %v1321_v47  ;;  %v795_v53 = vadd.f32 %v1318_v32, %v794_v42  ;;  %763 = vst [vmem:[%s1950_s7 + $0x1d0] sm:$0xff] %v2158_v48  ;;  %v867_v1 = vmul.f32 %v1321_v47, %v1321_v47 }
 0x17b   : > { %v526_v54 = vpop.f32.mrf.mxu0  ;;  %v2163_v57 = vpop.f32.mrf.mxu1 }
 0x17c   : > { %733 = vst [vmem:[%s1950_s7 + $0xe0] sm:$0xff] %v526_v54  ;;  %v796_v58 = vadd.f32 %v795_v53, %v526_v54  ;;  %v866_v59 = vmul.f32 %v526_v54, %v526_v54  ;;  %v928_v60 = vadd.f32 %v927_v52, %v865_v50  ;;  %766 = vst [vmem:[%s1950_s7 + $0x1e8] sm:$0xff] %v2163_v57 }
 0x17d   : > { %v1324_v63 = vpop.f32.mrf.mxu0  ;;  %v2169_v0 = vpop.f32.mrf.mxu1 }
 0x17e   : > { %v929_v3 = vadd.f32 %v928_v60, %v866_v59  ;;  %736 = vst [vmem:[%s1950_s7 + $0xf8] sm:$0xff] %v1324_v63  ;;  %v797_v5 = vadd.f32 %v1321_v47, %v796_v58  ;;  %765 = vst [vmem:[%s1950_s7 + $0x1e0] sm:$0xff] %v2169_v0  ;;  %v869_v15 = vmul.f32 %v1324_v63, %v1324_v63 }
 0x17f   : > { %v536_v6 = vpop.f32.mrf.mxu0  ;;  %v2174_v8 = vpop.f32.mrf.mxu1 }
 0x180   : > { %735 = vst [vmem:[%s1950_s7 + $0xf0] sm:$0xff] %v536_v6  ;;  %v798_v9 = vadd.f32 %v797_v5, %v536_v6  ;;  %v868_v11 = vmul.f32 %v536_v6, %v536_v6  ;;  %v930_v13 = vadd.f32 %v929_v3, %v867_v1  ;;  %768 = vst [vmem:[%s1950_s7 + $0x1f8] sm:$0xff] %v2174_v8 }
 0x181   : > { %v2186_v14 = vpop.f32.mrf.mxu1 }
 0x182   : > { %v799_v18 = vadd.f32 %v1324_v63, %v798_v9  ;;  %v931_v20 = vadd.f32 %v930_v13, %v868_v11  ;;  %767 = vst [vmem:[%s1950_s7 + $0x1f0] sm:$0xff] %v2186_v14 }
 0x183   : > { %1595 = shalt.err (!%p1592_p5)
}
 0x184   : > { %s1596_s7 = scalar_lea.hbm %s2184_s9, 8192  ;;  %s1600_s18 = scalar_lea.hbm %s2415_s30, 32768 }
 0x185   : > { %p1597_p9 = scmp.ne.s32.totalorder %s2184_s9, %s1596_s7  ;;  %p1601_p0 = scmp.lt.s32.totalorder %s2184_s9, %s2415_s30 }
 0x186   : > { %p1602_p6 = scmp.lt.s32.totalorder %s1600_s18, %s1596_s7 }
 0x187   : > { %p1598_p10 = pnand %p1597_p9, %p1892_p13 }
 0x188   : > { %p1603_p12 = por %p1602_p6, %p1601_p0 }
 0x189   : > { %p1599_p11 = pneg %p1598_p10 }
 0x18b   : > { %p1604_p1 = pnand %p1603_p12, %p1599_p11 }
 0x18d   : > { %1607 = shalt.err (!%p1604_p1)
}
 0x18e   : > { %s1744_s29 = smov 128   ;;  %s1745_s11 = smov 8   ;;  %v932_v21 = vadd.f32 %v931_v20, %v869_v15  ;;  %v800_v23 = vadd.f32 %v799_v18, %v2026_v22  ;;  %v870_v27 = vmul.f32 %v2026_v22, %v2026_v22  ;;  %v871_v28 = vmul.f32 %v2021_v19, %v2021_v19 }
 0x18f   : > { %1411 = dma.vmem_to_hbm [thread:$0]  (%p1892_p13), %s2176_s4, 8192, %s2184_s9, %s977_s2, %s1744_s29, %s1744_s29, %s1745_s11   ;;  %v872_v35 = vmul.f32 %v2036_v31, %v2036_v31  ;;  %v873_v39 = vmul.f32 %v2031_v26, %v2031_v26  ;;  %v874_v45 = vmul.f32 %v2046_v41, %v2046_v41  ;;  %v876_v53 = vmul.f32 %v2056_v51, %v2056_v51 }
 0x190   : > { %v933_v29 = vadd.f32 %v932_v21, %v870_v27  ;;  %v801_v32 = vadd.f32 %v2021_v19, %v800_v23  ;;  %v875_v19 = vmul.f32 %v2041_v36, %v2041_v36  ;;  %v878_v60 = vmul.f32 %v2066_v61, %v2066_v61  ;;  %s2416_s24 = sld [smem:[#allocation17_spill]]  ;;  %s1162_s4 = sshll.u32 %s1724_s19, 5 }
 0x191   : > { %v880_v5 = vmul.f32 %v2076_v7, %v2076_v7  ;;  %v882_v13 = vmul.f32 %v2086_v17, %v2086_v17  ;;  %v884_v21 = vmul.f32 %v2096_v30, %v2096_v30  ;;  %vm972_vm0 = vcmask 1040384   ;;  %s1013_s8 = sshll.u32 %s1952_s1, 4  ;;  %s2417_s23 = sld [smem:[#allocation23_spill]]  ;;  %s1014_s8 = int_to_ptr.vmem [resolvable:$true] %s1013_s8 }
 0x192   : > { %v802_v34 = vadd.f32 %v801_v32, %v2036_v31  ;;  %v934_v38 = vadd.f32 %v933_v29, %v871_v28  ;;  %v886_v29 = vmul.f32 %v2106_v43, %v2106_v43  ;;  %s982_s5 = scalar_lea.sflag [#allocation9], %s230_s3  ;;  %s1608_s7 = scalar_lea.vmem %s1014_s8, 32 }
 0x193   : > { %p1609_p13 = scmp.ne.s32.totalorder %s1014_s8, %s1608_s7  ;;  %s1746_s25 = smov [#allocation8]  }
 0x194   : > { %v935_v42 = vadd.f32 %v934_v38, %v872_v35  ;;  %v803_v44 = vadd.f32 %v2031_v26, %v802_v34  ;;  %v877_v26 = vmul.f32 %v2051_v46, %v2051_v46  ;;  %v888_v38 = vmul.f32 %v2116_v55, %v2116_v55  ;;  %s1612_s27 = sshll.u32 %s1746_s25, 4  ;;  %s1613_s27 = int_to_ptr.vmem [resolvable:$false] %s1612_s27 }
 0x195   : > { %s1614_s19 = scalar_lea.vmem %s1613_s27, 64  ;;  %p1615_p8 = scmp.lt.s32.totalorder %s1014_s8, %s1613_s27 }
 0x196   : > { %v804_v22 = vadd.f32 %v803_v44, %v2046_v41  ;;  %v936_v47 = vadd.f32 %v935_v42, %v873_v39  ;;  %p2418_p3 = scmp.ne.s32.totalorder %s2416_s24, 0  ;;  %p1616_p4 = scmp.lt.s32.totalorder %s1614_s19, %s1608_s7 }
 0x197   : > { %s1011_s28 = scalar_lea.hbm %s2417_s23, %s1162_s4 }
 0x198   : > { %v937_v50 = vadd.f32 %v936_v47, %v874_v45  ;;  %v805_v52 = vadd.f32 %v2041_v36, %v804_v22  ;;  %v879_v36 = vmul.f32 %v2061_v56, %v2061_v56  ;;  %v890_v22 = vmul.f32 %v2126_v4, %v2126_v4  ;;  %p1610_p2 = pnand %p1609_p13, %p2418_p3  ;;  %p1617_p5 = por %p1616_p4, %p1615_p8 }
 0x19a   : > { %v806_v31 = vadd.f32 %v805_v52, %v2056_v51  ;;  %v938_v54 = vadd.f32 %v937_v50, %v875_v19  ;;  %v892_v50 = vmul.f32 %v2136_v16, %v2136_v16  ;;  %p1611_p7 = pneg %p1610_p2 }
 0x19c   : > { %v939_v58 = vadd.f32 %v938_v54, %v876_v53  ;;  %v807_v59 = vadd.f32 %v2051_v46, %v806_v31  ;;  %v881_v46 = vmul.f32 %v2071_v2, %v2071_v2  ;;  %v894_v54 = vmul.f32 %v2146_v33, %v2146_v33  ;;  %p1618_p9 = pnand %p1617_p5, %p1611_p7 }
 0x19e   : > { %v808_v41 = vadd.f32 %v807_v59, %v2066_v61  ;;  %v940_v63 = vadd.f32 %v939_v58, %v877_v26 }
 0x1a0   : > { %v941_v1 = vadd.f32 %v940_v63, %v878_v60  ;;  %v809_v3 = vadd.f32 %v2061_v56, %v808_v41  ;;  %v883_v56 = vmul.f32 %v2081_v12, %v2081_v12  ;;  %v896_v41 = vmul.f32 %v2158_v48, %v2158_v48 }
 0x1a2   : > { %v810_v51 = vadd.f32 %v809_v3, %v2076_v7  ;;  %v942_v6 = vadd.f32 %v941_v1, %v879_v36  ;;  %v898_v1 = vmul.f32 %v2169_v0, %v2169_v0 }
 0x1a4   : > { %v943_v9 = vadd.f32 %v942_v6, %v880_v5  ;;  %v811_v11 = vadd.f32 %v2071_v2, %v810_v51  ;;  %v885_v2 = vmul.f32 %v2091_v24, %v2091_v24  ;;  %v900_v6 = vmul.f32 %v2186_v14, %v2186_v14 }
 0x1a6   : > { %v812_v61 = vadd.f32 %v811_v11, %v2086_v17  ;;  %v944_v15 = vadd.f32 %v943_v9, %v881_v46 }
 0x1a8   : > { %v945_v18 = vadd.f32 %v944_v15, %v882_v13  ;;  %v813_v20 = vadd.f32 %v2081_v12, %v812_v61  ;;  %v887_v12 = vmul.f32 %v2101_v37, %v2101_v37 }
 0x1aa   : > { %v814_v7 = vadd.f32 %v813_v20, %v2096_v30  ;;  %v946_v23 = vadd.f32 %v945_v18, %v883_v56 }
 0x1ac   : > { %v947_v27 = vadd.f32 %v946_v23, %v884_v21  ;;  %v815_v28 = vadd.f32 %v2091_v24, %v814_v7  ;;  %v889_v24 = vmul.f32 %v2111_v49, %v2111_v49 }
 0x1ae   : > { %v816_v17 = vadd.f32 %v815_v28, %v2106_v43  ;;  %v948_v32 = vadd.f32 %v947_v27, %v885_v2  ;;  %v971_v2 = vld [vmem:[%s1952_s1] sm:$0x3] }
 0x1b0   : > { %v949_v34 = vadd.f32 %v948_v32, %v886_v29  ;;  %v817_v35 = vadd.f32 %v2101_v37, %v816_v17  ;;  %v891_v37 = vmul.f32 %v2121_v62, %v2121_v62 }
 0x1b2   : > { %v818_v30 = vadd.f32 %v817_v35, %v2116_v55  ;;  %v950_v39 = vadd.f32 %v949_v34, %v887_v12 }
 0x1b4   : > { %v951_v42 = vadd.f32 %v950_v39, %v888_v38  ;;  %v819_v44 = vadd.f32 %v2111_v49, %v818_v30  ;;  %v893_v49 = vmul.f32 %v2131_v10, %v2131_v10 }
 0x1b6   : > { %v820_v43 = vadd.f32 %v819_v44, %v2126_v4  ;;  %v952_v45 = vadd.f32 %v951_v42, %v889_v24 }
 0x1b8   : > { %v953_v47 = vadd.f32 %v952_v45, %v890_v22  ;;  %v821_v19 = vadd.f32 %v2121_v62, %v820_v43  ;;  %v895_v62 = vmul.f32 %v2141_v25, %v2141_v25 }
 0x1ba   : > { %v822_v55 = vadd.f32 %v821_v19, %v2136_v16  ;;  %v954_v52 = vadd.f32 %v953_v47, %v891_v37 }
 0x1bc   : > { %v955_v31 = vadd.f32 %v954_v52, %v892_v50  ;;  %v823_v53 = vadd.f32 %v2131_v10, %v822_v55  ;;  %v897_v10 = vmul.f32 %v2151_v40, %v2151_v40 }
 0x1be   : > { %v824_v4 = vadd.f32 %v823_v53, %v2146_v33  ;;  %v956_v26 = vadd.f32 %v955_v31, %v893_v49 }
 0x1c0   : > { %v957_v58 = vadd.f32 %v956_v26, %v894_v54  ;;  %v825_v59 = vadd.f32 %v2141_v25, %v824_v4  ;;  %v899_v25 = vmul.f32 %v2163_v57, %v2163_v57 }
 0x1c2   : > { %v826_v16 = vadd.f32 %v825_v59, %v2158_v48  ;;  %v958_v60 = vadd.f32 %v957_v58, %v895_v62 }
 0x1c4   : > { %v959_v63 = vadd.f32 %v958_v60, %v896_v41  ;;  %v827_v36 = vadd.f32 %v2151_v40, %v826_v16  ;;  %v901_v40 = vmul.f32 %v2174_v8, %v2174_v8 }
 0x1c6   : > { %v828_v33 = vadd.f32 %v827_v36, %v2169_v0  ;;  %v960_v3 = vadd.f32 %v959_v63, %v897_v10 }
 0x1c8   : > { %v961_v51 = vadd.f32 %v960_v3, %v898_v1  ;;  %v829_v5 = vadd.f32 %v2163_v57, %v828_v33 }
 0x1ca   : > { %v830_v48 = vadd.f32 %v829_v5, %v2186_v14  ;;  %v962_v46 = vadd.f32 %v961_v51, %v899_v25 }
 0x1cc   : > { %v831_v9 = vadd.f32 %v2174_v8, %v830_v48  ;;  %v963_v0 = vadd.f32 %v962_v46, %v900_v6 }
 0x1ce   : > { %v832_v11 = vrot.slane %v831_v9, 4  ;;  %v964_v61 = vadd.f32 %v963_v0, %v901_v40 }
 0x1d0   : > { %v833_v13 = vadd.f32 %v832_v11, %v831_v9  ;;  %v965_v15 = vrot.slane %v964_v61, 4 }
 0x1d2   : > { %v834_v57 = vrot.slane %v833_v13, 2  ;;  %v966_v56 = vadd.f32 %v965_v15, %v964_v61 }
 0x1d4   : > { %v835_v18 = vadd.f32 %v834_v57, %v833_v13  ;;  %v967_v14 = vrot.slane %v966_v56, 2 }
 0x1d6   : > { %v836_v20 = vrot.slane %v835_v18, 1  ;;  %v968_v7 = vadd.f32 %v967_v14, %v966_v56 }
 0x1d8   : > { %v969_v21 = vrot.slane %v968_v7, 1  ;;  %v837_v8 = vadd.f32 %v836_v20, %v835_v18 }
 0x1da   : > { %v970_v23 = vadd.f32 %v969_v21, %v968_v7 }
 0x1dc   : > { %v973_v27 = vsel %vm972_vm0, %v837_v8, %v970_v23 }
 0x1dd   : > { %v974_v28 = vadd.f32 %v973_v27, %v971_v2 }
 0x1df   : > { %975 = vst [vmem:[%s1952_s1] sm:$0x3] %v974_v28 }
 0x1e0   : > { %1621 = shalt.err (!%p1618_p9)
}
 0x1e1   : > { %s1622_s18 = scalar_lea.hbm %s1011_s28, 32  ;;  %s1626_s10 = scalar_lea.hbm %s2417_s23, 64 }
 0x1e2   : > { %p1623_p10 = scmp.ne.s32.totalorder %s1011_s28, %s1622_s18  ;;  %p1627_p6 = scmp.lt.s32.totalorder %s1011_s28, %s2417_s23 }
 0x1e3   : > { %p1628_p12 = scmp.lt.s32.totalorder %s1626_s10, %s1622_s18 }
 0x1e4   : > { %p1624_p11 = pnand %p1623_p10, %p2418_p3 }
 0x1e5   : > { %p1629_p1 = por %p1628_p12, %p1627_p6 }
 0x1e6   : > { %p1625_p0 = pneg %p1624_p11 }
 0x1e8   : > { %p1630_p13 = pnand %p1629_p1, %p1625_p0 }
 0x1ea   : > { %1633 = shalt.err (!%p1630_p13)
}
 0x1eb   : > { %1412 = dma.vmem_to_hbm [thread:$0]  (%p2418_p3), %s1014_s8, 32, %s1011_s28, %s982_s5  }
 0x1ec PF: > { %s2419_s11 = sld [smem:[#allocation15_spill]]  ;;  %p1433_p2 = scmp.ge.s32.totalorder %s1736_s22, 2 }
 0x1ed   : > { %s2420_s4 = sld [smem:[#allocation16_spill]] }
 0x1f2   : > { %s1025_s9 = sand.u32 1, %s2419_s11  }
 0x1f3   : > { %p2421_p7 = scmp.ne.s32.totalorder %s2420_s4, 0  ;;  %s1026_s2 = scalar_lea.sflag [#allocation4], %s1025_s9 }
 0x1f5   : > { %p1424_p8 = pnand %p1433_p2, %p2421_p7 }
 0x1f7   : > { %p1425_p4 = pneg %p1424_p8 }
 0x1f9   : > { %1687 = dma.done.wait (%p1425_p4), %s1026_s2, 8192  }
 0x1fa   : > { %1689 = vsyncadd (%p1425_p4), %s1026_s2, 4294959104  ;;  %s2422_s7 = sld [smem:[#allocation14_spill]] }
 0x1fb   : > { %s2423_s25 = sld [smem:[#allocation18_spill]] }
 0x200   : > { %s1034_s27 = sand.u32 1, %s2422_s7  }
 0x201   : > { %p2424_p5 = scmp.ne.s32.totalorder %s2423_s25, 0  ;;  %s1035_s24 = scalar_lea.sflag [#allocation9], %s1034_s27 }
 0x203   : > { %p1427_p9 = pnand %p1433_p2, %p2424_p5 }
 0x205   : > { %p1428_p10 = pneg %p1427_p9 }
 0x207   : > { %1691 = dma.done.wait (%p1428_p10), %s1035_s24, 32  }
 0x208   : > { %1693 = vsyncadd (%p1428_p10), %s1035_s24, 4294967264  ;;  %s24_s22 = sadd.s32 1, %s1736_s22   ;;  %s2425_s8 = smov %s1906_s12 }
 0x209   : > { %p21_p3 = scmp.ge.s32.totalorder %s24_s22, 6   ;;  %s2426_s28 = sld [smem:[#allocation19_spill]] }
 0x20a   : > { %s2427_s12 = smov %s1700_s13  ;;  %s2428_s13 = smov %s1704_s14 }
 0x20b   : > { %s2429_s14 = smov %s2425_s8  ;;  %s2430_s15 = smov %s1712_s16 }
 0x20c   : > { %s2431_s16 = smov %s1716_s17  ;;  %s2432_s17 = smov %s1909_s26 }
 0x20d   : > { %s2433_s18 = smov %s1728_s20  ;;  %s2434_s19 = smov %s1732_s21 }
 0x20e   : > { %s2436_s21 = smov %s2442_s6  ;;  %23 = sbr.rel (!%p21_p3) target bundleno = 16 (0x10), region = 98 }
 0x20f   : > { %s2435_s20 = smov %s2426_s28 }
 0x213   :  { %1040 = vsyncpa [#allocation3], 1 }
 0x214   :  { %1042 = vsyncpa [#allocation3 + $0x1], 1 }
 0x215   :  { %1043 = vsyncpa [#allocation6], 1 }
 0x216   :  { %1044 = vsyncpa [#allocation4], 1 }
 0x217   :  { %1046 = vsyncpa [#allocation4 + $0x1], 1 }
 0x218   :  { %1047 = vsyncpa [#allocation9], 1 }
 0x219   :  { %1049 = vsyncpa [#allocation9 + $0x1], 1 }

</bundles_post_ra>
